<compile_context>
chip_gen: v5e
topology: v5e:2x2
jax: 0.10.0
libtpu: 0.0.40
codegen_flags: <defaults>
</compile_context>

<pallas_src>
import functools

import numpy as np
import jax
import jax.numpy as jnp
from jax.experimental import pallas as pl
from jax.experimental.pallas import tpu as pltpu

_EPS = 1e-5
# 3x3 taps in row-major (ky, kx) order; matches the (Cout, 3, 3, Cin) weight flatten.
_TAPS = tuple((ky, kx) for ky in (-1, 0, 1) for kx in (-1, 0, 1))


def _border_masks(H, W, N):
    """Trace-time constant 'same'-padding masks, (9, N*H*W), image pattern per sample."""
    pos = np.arange(H * W)
    row, col = pos // W, pos % W
    m = np.empty((9, H * W), np.float32)
    for t, (ky, kx) in enumerate(_TAPS):
        m[t] = ((row + ky >= 0) & (row + ky < H) &
                (col + kx >= 0) & (col + kx < W)).astype(np.float32)
    return np.tile(m, (1, N))


def _stacked_taps(x, masks, W, L):
    """x: (C, L) f32 -> (9*C, L) bf16 of rolled+masked taps ('same' 3x3, no jnp.pad).

    Output position p reads source p + ky*W + kx; wrap-around / out-of-image sources
    are zeroed by the precomputed masks, so the roll never leaks across samples.
    """
    taps = []
    for t, (ky, kx) in enumerate(_TAPS):
        d = ky * W + kx
        if d == 0:
            taps.append(x)                                     # center tap, always valid
        else:
            taps.append(pltpu.roll(x, (-d) % L, 1) * masks[t:t + 1])
    return jnp.concatenate(taps, axis=0).astype(jnp.bfloat16)


def _bn_relu(z, gamma, beta, count):
    """Train-mode BatchNorm (biased variance, eps=1e-5) + ReLU, two-pass variance."""
    inv_n = 1.0 / count
    mean = jnp.sum(z, axis=1, keepdims=True) * inv_n           # (C, 1)
    zc = z - mean
    var = jnp.sum(zc * zc, axis=1, keepdims=True) * inv_n
    return jnp.maximum(zc * (gamma * jax.lax.rsqrt(var + _EPS)) + beta, 0.0)


def unet_layer_kernel(x_ref, masks_ref, w1_ref, w2_ref,
                      g1_ref, b1_ref, g2_ref, b2_ref, o_ref, *, W):
    # x_ref    : (Cin,  N*H*W) f32     activations, whole batch, lane-dense spatial axis
    # masks_ref: (9,    N*H*W) f32     'same'-padding border masks (constants)
    # w1_ref   : (Cout, 9*Cin) bf16    conv1 weights, tap-major
    # w2_ref   : (Cout, 9*Cout) bf16   conv2 weights, tap-major
    # g*/b*    : (Cout, 1) f32         BatchNorm gamma / beta
    # o_ref    : (Cout, N*H*W) f32     layer output
    L = x_ref.shape[1]
    masks = masks_ref[...]
    x = x_ref[...]

    # conv1: single MXU push, K = 9*Cin, bf16 operands / f32 accumulation.
    z1 = jnp.dot(w1_ref[...], _stacked_taps(x, masks, W, L),
                 preferred_element_type=jnp.float32)
    h1 = _bn_relu(z1, g1_ref[...], b1_ref[...], L)             # BN1 + ReLU (fused)

    # conv2: single MXU push, K = 9*Cout. z1/h1 never leave VMEM.
    z2 = jnp.dot(w2_ref[...], _stacked_taps(h1, masks, W, L),
                 preferred_element_type=jnp.float32)
    o_ref[...] = _bn_relu(z2, g2_ref[...], b2_ref[...], L)     # BN2 + ReLU (fused)


def _full_spec(shape):
    n = len(shape)
    return pl.BlockSpec(shape, lambda i, n=n: (0,) * n)


@jax.jit
def unet_layer_forward(x_nchw, params):
    N, c_in, H, W = x_nchw.shape
    c_out = params["gamma1"].shape[0]
    L = N * H * W

    # Channels-first, batch+spatial flattened onto the lane axis: (N,Cin,H,W)->(Cin, N*H*W).
    x_flat = jnp.transpose(x_nchw, (1, 0, 2, 3)).reshape(c_in, L)

    # Kernel-format weights: (Cout, Cin, 3, 3) -> tap-major (Cout, 9*Cin) in bf16.
    # Conv biases fold away exactly under train-mode BatchNorm (mean subtraction), so
    # the kernel never consumes them.
    w1 = jnp.transpose(params["w1"], (0, 2, 3, 1)).reshape(c_out, 9 * c_in).astype(jnp.bfloat16)
    w2 = jnp.transpose(params["w2"], (0, 2, 3, 1)).reshape(c_out, 9 * c_out).astype(jnp.bfloat16)
    g1 = params["gamma1"].reshape(c_out, 1).astype(jnp.float32)
    b1 = params["beta1"].reshape(c_out, 1).astype(jnp.float32)
    g2 = params["gamma2"].reshape(c_out, 1).astype(jnp.float32)
    b2 = params["beta2"].reshape(c_out, 1).astype(jnp.float32)

    masks = jnp.asarray(_border_masks(H, W, N))                # (9, L) trace-time constant

    out_flat = pl.pallas_call(
        functools.partial(unet_layer_kernel, W=W),
        out_shape=jax.ShapeDtypeStruct((c_out, L), jnp.float32),
        grid=(1,),
        in_specs=[_full_spec((c_in, L)),
                  _full_spec((9, L)),
                  _full_spec((c_out, 9 * c_in)),
                  _full_spec((c_out, 9 * c_out)),
                  _full_spec((c_out, 1)), _full_spec((c_out, 1)),
                  _full_spec((c_out, 1)), _full_spec((c_out, 1))],
        out_specs=_full_spec((c_out, L)),
    )(x_flat, masks, w1, w2, g1, b1, g2, b2)

    return jnp.transpose(out_flat.reshape(c_out, N, H, W), (1, 0, 2, 3))


def init_params(key, c_in, c_out):
    """PyTorch-layout parameters of the UNetLayer (train-mode BatchNorm defaults)."""
    k1, k2, k3, k4 = jax.random.split(key, 4)
    return {
        "w1": 0.1 * jax.random.normal(k1, (c_out, c_in, 3, 3), jnp.float32),
        "b1": 0.05 * jax.random.normal(k3, (c_out,), jnp.float32),
        "gamma1": jnp.ones((c_out,), jnp.float32),
        "beta1": jnp.zeros((c_out,), jnp.float32),
        "w2": 0.1 * jax.random.normal(k2, (c_out, c_out, 3, 3), jnp.float32),
        "b2": 0.05 * jax.random.normal(k4, (c_out,), jnp.float32),
        "gamma2": jnp.ones((c_out,), jnp.float32),
        "beta2": jnp.zeros((c_out,), jnp.float32),
    }


def unet_layer_reference(x, params):
    """Pure-JAX reference of the PyTorch module forward (train-mode BN, with biases)."""
    def conv(h, w, b):
        y = jax.lax.conv_general_dilated(h, w, (1, 1), "SAME",
                                         dimension_numbers=("NCHW", "OIHW", "NCHW"))
        return y + b.reshape(1, -1, 1, 1)

    def bn_relu(y, g, b):
        mean = jnp.mean(y, axis=(0, 2, 3), keepdims=True)
        var = jnp.var(y, axis=(0, 2, 3), keepdims=True)        # biased (train mode)
        yn = (y - mean) * jax.lax.rsqrt(var + _EPS)
        return jnp.maximum(g.reshape(1, -1, 1, 1) * yn + b.reshape(1, -1, 1, 1), 0.0)

    h = bn_relu(conv(x, params["w1"], params["b1"]), params["gamma1"], params["beta1"])
    return bn_relu(conv(h, params["w2"], params["b2"]), params["gamma2"], params["beta2"])


if __name__ == "__main__":
    key = jax.random.PRNGKey(0)
    kx, kp = jax.random.split(key)

    N, C_IN, C_OUT, H, W = 2, 4, 8, 16, 16
    x = jax.random.normal(kx, (N, C_IN, H, W), jnp.float32)
    params = init_params(kp, C_IN, C_OUT)

    out = unet_layer_forward(x, params)
    jax.block_until_ready(out)

    assert out.shape == (N, C_OUT, H, W), out.shape
    assert bool(jnp.all(jnp.isfinite(out)))
    assert bool(jnp.all(out >= 0.0))                       # ReLU output is non-negative

    ref = unet_layer_reference(x, params)
    assert float(jnp.max(jnp.abs(out - ref))) < 6e-2       # bf16-operand tolerance

    print("KERNEL_OK")
</pallas_src>

<mosaic_0001>
module attributes {stable_mosaic.version = 11 : i64} {
  func.func @unet_layer_kernel(%arg0: i32, %arg1: memref<4x512xf32, #tpu.memory_space<vmem>>, %arg2: memref<9x512xf32, #tpu.memory_space<vmem>>, %arg3: memref<8x36xbf16, #tpu.memory_space<vmem>>, %arg4: memref<8x72xbf16, #tpu.memory_space<vmem>>, %arg5: memref<8x1xf32, #tpu.memory_space<vmem>>, %arg6: memref<8x1xf32, #tpu.memory_space<vmem>>, %arg7: memref<8x1xf32, #tpu.memory_space<vmem>>, %arg8: memref<8x1xf32, #tpu.memory_space<vmem>>, %arg9: memref<8x512xf32, #tpu.memory_space<vmem>>) attributes {dimension_semantics = [#tpu.dimension_semantics<arbitrary>], iteration_bounds = array<i64: 1>, scalar_prefetch = 0 : i64, scratch_operands = 0 : i64, tpu.core_type = #tpu.core_type<tc>, window_params = [{pipeline_mode = #tpu.pipeline_mode<synchronous>, transform_indices = @transform_0, window_bounds = array<i64: 4, 512>}, {pipeline_mode = #tpu.pipeline_mode<synchronous>, transform_indices = @transform_1, window_bounds = array<i64: 9, 512>}, {pipeline_mode = #tpu.pipeline_mode<synchronous>, transform_indices = @transform_2, window_bounds = array<i64: 8, 36>}, {pipeline_mode = #tpu.pipeline_mode<synchronous>, transform_indices = @transform_3, window_bounds = array<i64: 8, 72>}, {pipeline_mode = #tpu.pipeline_mode<synchronous>, transform_indices = @transform_4, window_bounds = array<i64: 8, 1>}, {pipeline_mode = #tpu.pipeline_mode<synchronous>, transform_indices = @transform_5, window_bounds = array<i64: 8, 1>}, {pipeline_mode = #tpu.pipeline_mode<synchronous>, transform_indices = @transform_6, window_bounds = array<i64: 8, 1>}, {pipeline_mode = #tpu.pipeline_mode<synchronous>, transform_indices = @transform_7, window_bounds = array<i64: 8, 1>}, {pipeline_mode = #tpu.pipeline_mode<synchronous>, transform_indices = @transform_8, window_bounds = array<i64: 8, 512>}]} {
    %c0 = arith.constant 0 : index
    %c0_0 = arith.constant 0 : index
    %0 = vector.load %arg2[%c0, %c0_0] : memref<9x512xf32, #tpu.memory_space<vmem>>, vector<9x512xf32>
    %c0_1 = arith.constant 0 : index
    %c0_2 = arith.constant 0 : index
    %1 = vector.load %arg1[%c0_1, %c0_2] : memref<4x512xf32, #tpu.memory_space<vmem>>, vector<4x512xf32>
    %c0_3 = arith.constant 0 : index
    %c0_4 = arith.constant 0 : index
    %2 = vector.load %arg3[%c0_3, %c0_4] : memref<8x36xbf16, #tpu.memory_space<vmem>>, vector<8x36xbf16>
    %c17_i32 = arith.constant 17 : i32
    %3 = tpu.dynamic_rotate %1 by %c17_i32 dim 1 : vector<4x512xf32>, i32 -> vector<4x512xf32>
    %4 = vector.extract_strided_slice %0 {offsets = [0, 0], sizes = [1, 512], strides = [1, 1]} : vector<9x512xf32> to vector<1x512xf32>
    %5 = vector.broadcast %4 : vector<1x512xf32> to vector<4x512xf32>
    %6 = arith.mulf %3, %5 : vector<4x512xf32>
    %c16_i32 = arith.constant 16 : i32
    %7 = tpu.dynamic_rotate %1 by %c16_i32 dim 1 : vector<4x512xf32>, i32 -> vector<4x512xf32>
    %8 = vector.extract_strided_slice %0 {offsets = [1, 0], sizes = [1, 512], strides = [1, 1]} : vector<9x512xf32> to vector<1x512xf32>
    %9 = vector.broadcast %8 : vector<1x512xf32> to vector<4x512xf32>
    %10 = arith.mulf %7, %9 : vector<4x512xf32>
    %c15_i32 = arith.constant 15 : i32
    %11 = tpu.dynamic_rotate %1 by %c15_i32 dim 1 : vector<4x512xf32>, i32 -> vector<4x512xf32>
    %12 = vector.extract_strided_slice %0 {offsets = [2, 0], sizes = [1, 512], strides = [1, 1]} : vector<9x512xf32> to vector<1x512xf32>
    %13 = vector.broadcast %12 : vector<1x512xf32> to vector<4x512xf32>
    %14 = arith.mulf %11, %13 : vector<4x512xf32>
    %c1_i32 = arith.constant 1 : i32
    %15 = tpu.dynamic_rotate %1 by %c1_i32 dim 1 : vector<4x512xf32>, i32 -> vector<4x512xf32>
    %16 = vector.extract_strided_slice %0 {offsets = [3, 0], sizes = [1, 512], strides = [1, 1]} : vector<9x512xf32> to vector<1x512xf32>
    %17 = vector.broadcast %16 : vector<1x512xf32> to vector<4x512xf32>
    %18 = arith.mulf %15, %17 : vector<4x512xf32>
    %c511_i32 = arith.constant 511 : i32
    %19 = tpu.dynamic_rotate %1 by %c511_i32 dim 1 : vector<4x512xf32>, i32 -> vector<4x512xf32>
    %20 = vector.extract_strided_slice %0 {offsets = [5, 0], sizes = [1, 512], strides = [1, 1]} : vector<9x512xf32> to vector<1x512xf32>
    %21 = vector.broadcast %20 : vector<1x512xf32> to vector<4x512xf32>
    %22 = arith.mulf %19, %21 : vector<4x512xf32>
    %c497_i32 = arith.constant 497 : i32
    %23 = tpu.dynamic_rotate %1 by %c497_i32 dim 1 : vector<4x512xf32>, i32 -> vector<4x512xf32>
    %24 = vector.extract_strided_slice %0 {offsets = [6, 0], sizes = [1, 512], strides = [1, 1]} : vector<9x512xf32> to vector<1x512xf32>
    %25 = vector.broadcast %24 : vector<1x512xf32> to vector<4x512xf32>
    %26 = arith.mulf %23, %25 : vector<4x512xf32>
    %c496_i32 = arith.constant 496 : i32
    %27 = tpu.dynamic_rotate %1 by %c496_i32 dim 1 : vector<4x512xf32>, i32 -> vector<4x512xf32>
    %28 = vector.extract_strided_slice %0 {offsets = [7, 0], sizes = [1, 512], strides = [1, 1]} : vector<9x512xf32> to vector<1x512xf32>
    %29 = vector.broadcast %28 : vector<1x512xf32> to vector<4x512xf32>
    %30 = arith.mulf %27, %29 : vector<4x512xf32>
    %c495_i32 = arith.constant 495 : i32
    %31 = tpu.dynamic_rotate %1 by %c495_i32 dim 1 : vector<4x512xf32>, i32 -> vector<4x512xf32>
    %32 = vector.extract_strided_slice %0 {offsets = [8, 0], sizes = [1, 512], strides = [1, 1]} : vector<9x512xf32> to vector<1x512xf32>
    %33 = vector.broadcast %32 : vector<1x512xf32> to vector<4x512xf32>
    %34 = arith.mulf %31, %33 : vector<4x512xf32>
    %35 = tpu.concatenate %6, %10, %14, %18, %1, %22, %26, %30, %34 in 0 : vector<4x512xf32>, vector<4x512xf32>, vector<4x512xf32>, vector<4x512xf32>, vector<4x512xf32>, vector<4x512xf32>, vector<4x512xf32>, vector<4x512xf32>, vector<4x512xf32> -> vector<36x512xf32>
    %36 = arith.truncf %35 : vector<36x512xf32> to vector<36x512xbf16>
    %cst = arith.constant dense<0.000000e+00> : vector<8x512xf32>
    %37 = tpu.matmul %2, %36, %cst {dimension_numbers = #tpu.dot_dimension_numbers<[1], [0], [0], [1], [0, 0, 1, 1], [], []>} : vector<8x36xbf16>, vector<36x512xbf16>, vector<8x512xf32> -> vector<8x512xf32>
    %c0_5 = arith.constant 0 : index
    %c0_6 = arith.constant 0 : index
    %38 = vector.load %arg5[%c0_5, %c0_6] : memref<8x1xf32, #tpu.memory_space<vmem>>, vector<8x1xf32>
    %c0_7 = arith.constant 0 : index
    %c0_8 = arith.constant 0 : index
    %39 = vector.load %arg6[%c0_7, %c0_8] : memref<8x1xf32, #tpu.memory_space<vmem>>, vector<8x1xf32>
    %cst_9 = arith.constant dense<0.000000e+00> : vector<8xf32>
    %40 = vector.multi_reduction <add>, %37, %cst_9 [1] : vector<8x512xf32> to vector<8xf32>
    %41 = vector.shape_cast %40 : vector<8xf32> to vector<8x1xf32>
    %cst_10 = arith.constant 0.001953125 : f32
    %42 = vector.broadcast %cst_10 : f32 to vector<8x1xf32>
    %43 = arith.mulf %41, %42 : vector<8x1xf32>
    %44 = vector.broadcast %43 : vector<8x1xf32> to vector<8x512xf32>
    %45 = arith.subf %37, %44 : vector<8x512xf32>
    %46 = arith.mulf %45, %45 : vector<8x512xf32>
    %cst_11 = arith.constant dense<0.000000e+00> : vector<8xf32>
    %47 = vector.multi_reduction <add>, %46, %cst_11 [1] : vector<8x512xf32> to vector<8xf32>
    %48 = vector.shape_cast %47 : vector<8xf32> to vector<8x1xf32>
    %cst_12 = arith.constant 0.001953125 : f32
    %49 = vector.broadcast %cst_12 : f32 to vector<8x1xf32>
    %50 = arith.mulf %48, %49 : vector<8x1xf32>
    %cst_13 = arith.constant 9.99999974E-6 : f32
    %51 = vector.broadcast %cst_13 : f32 to vector<8x1xf32>
    %52 = arith.addf %50, %51 : vector<8x1xf32>
    %53 = math.rsqrt %52 : vector<8x1xf32>
    %54 = arith.mulf %38, %53 : vector<8x1xf32>
    %55 = vector.broadcast %54 : vector<8x1xf32> to vector<8x512xf32>
    %56 = arith.mulf %45, %55 : vector<8x512xf32>
    %57 = vector.broadcast %39 : vector<8x1xf32> to vector<8x512xf32>
    %58 = arith.addf %56, %57 : vector<8x512xf32>
    %cst_14 = arith.constant 0.000000e+00 : f32
    %59 = vector.broadcast %cst_14 : f32 to vector<8x512xf32>
    %60 = arith.maximumf %58, %59 : vector<8x512xf32>
    %c0_15 = arith.constant 0 : index
    %c0_16 = arith.constant 0 : index
    %61 = vector.load %arg4[%c0_15, %c0_16] : memref<8x72xbf16, #tpu.memory_space<vmem>>, vector<8x72xbf16>
    %c17_i32_17 = arith.constant 17 : i32
    %62 = tpu.dynamic_rotate %60 by %c17_i32_17 dim 1 : vector<8x512xf32>, i32 -> vector<8x512xf32>
    %63 = vector.extract_strided_slice %0 {offsets = [0, 0], sizes = [1, 512], strides = [1, 1]} : vector<9x512xf32> to vector<1x512xf32>
    %64 = vector.broadcast %63 : vector<1x512xf32> to vector<8x512xf32>
    %65 = arith.mulf %62, %64 : vector<8x512xf32>
    %c16_i32_18 = arith.constant 16 : i32
    %66 = tpu.dynamic_rotate %60 by %c16_i32_18 dim 1 : vector<8x512xf32>, i32 -> vector<8x512xf32>
    %67 = vector.extract_strided_slice %0 {offsets = [1, 0], sizes = [1, 512], strides = [1, 1]} : vector<9x512xf32> to vector<1x512xf32>
    %68 = vector.broadcast %67 : vector<1x512xf32> to vector<8x512xf32>
    %69 = arith.mulf %66, %68 : vector<8x512xf32>
    %c15_i32_19 = arith.constant 15 : i32
    %70 = tpu.dynamic_rotate %60 by %c15_i32_19 dim 1 : vector<8x512xf32>, i32 -> vector<8x512xf32>
    %71 = vector.extract_strided_slice %0 {offsets = [2, 0], sizes = [1, 512], strides = [1, 1]} : vector<9x512xf32> to vector<1x512xf32>
    %72 = vector.broadcast %71 : vector<1x512xf32> to vector<8x512xf32>
    %73 = arith.mulf %70, %72 : vector<8x512xf32>
    %c1_i32_20 = arith.constant 1 : i32
    %74 = tpu.dynamic_rotate %60 by %c1_i32_20 dim 1 : vector<8x512xf32>, i32 -> vector<8x512xf32>
    %75 = vector.extract_strided_slice %0 {offsets = [3, 0], sizes = [1, 512], strides = [1, 1]} : vector<9x512xf32> to vector<1x512xf32>
    %76 = vector.broadcast %75 : vector<1x512xf32> to vector<8x512xf32>
    %77 = arith.mulf %74, %76 : vector<8x512xf32>
    %c511_i32_21 = arith.constant 511 : i32
    %78 = tpu.dynamic_rotate %60 by %c511_i32_21 dim 1 : vector<8x512xf32>, i32 -> vector<8x512xf32>
    %79 = vector.extract_strided_slice %0 {offsets = [5, 0], sizes = [1, 512], strides = [1, 1]} : vector<9x512xf32> to vector<1x512xf32>
    %80 = vector.broadcast %79 : vector<1x512xf32> to vector<8x512xf32>
    %81 = arith.mulf %78, %80 : vector<8x512xf32>
    %c497_i32_22 = arith.constant 497 : i32
    %82 = tpu.dynamic_rotate %60 by %c497_i32_22 dim 1 : vector<8x512xf32>, i32 -> vector<8x512xf32>
    %83 = vector.extract_strided_slice %0 {offsets = [6, 0], sizes = [1, 512], strides = [1, 1]} : vector<9x512xf32> to vector<1x512xf32>
    %84 = vector.broadcast %83 : vector<1x512xf32> to vector<8x512xf32>
    %85 = arith.mulf %82, %84 : vector<8x512xf32>
    %c496_i32_23 = arith.constant 496 : i32
    %86 = tpu.dynamic_rotate %60 by %c496_i32_23 dim 1 : vector<8x512xf32>, i32 -> vector<8x512xf32>
    %87 = vector.extract_strided_slice %0 {offsets = [7, 0], sizes = [1, 512], strides = [1, 1]} : vector<9x512xf32> to vector<1x512xf32>
    %88 = vector.broadcast %87 : vector<1x512xf32> to vector<8x512xf32>
    %89 = arith.mulf %86, %88 : vector<8x512xf32>
    %c495_i32_24 = arith.constant 495 : i32
    %90 = tpu.dynamic_rotate %60 by %c495_i32_24 dim 1 : vector<8x512xf32>, i32 -> vector<8x512xf32>
    %91 = vector.extract_strided_slice %0 {offsets = [8, 0], sizes = [1, 512], strides = [1, 1]} : vector<9x512xf32> to vector<1x512xf32>
    %92 = vector.broadcast %91 : vector<1x512xf32> to vector<8x512xf32>
    %93 = arith.mulf %90, %92 : vector<8x512xf32>
    %94 = tpu.concatenate %65, %69, %73, %77, %60, %81, %85, %89, %93 in 0 : vector<8x512xf32>, vector<8x512xf32>, vector<8x512xf32>, vector<8x512xf32>, vector<8x512xf32>, vector<8x512xf32>, vector<8x512xf32>, vector<8x512xf32>, vector<8x512xf32> -> vector<72x512xf32>
    %95 = arith.truncf %94 : vector<72x512xf32> to vector<72x512xbf16>
    %cst_25 = arith.constant dense<0.000000e+00> : vector<8x512xf32>
    %96 = tpu.matmul %61, %95, %cst_25 {dimension_numbers = #tpu.dot_dimension_numbers<[1], [0], [0], [1], [0, 0, 1, 1], [], []>} : vector<8x72xbf16>, vector<72x512xbf16>, vector<8x512xf32> -> vector<8x512xf32>
    %c0_26 = arith.constant 0 : index
    %c0_27 = arith.constant 0 : index
    %97 = vector.load %arg7[%c0_26, %c0_27] : memref<8x1xf32, #tpu.memory_space<vmem>>, vector<8x1xf32>
    %c0_28 = arith.constant 0 : index
    %c0_29 = arith.constant 0 : index
    %98 = vector.load %arg8[%c0_28, %c0_29] : memref<8x1xf32, #tpu.memory_space<vmem>>, vector<8x1xf32>
    %cst_30 = arith.constant dense<0.000000e+00> : vector<8xf32>
    %99 = vector.multi_reduction <add>, %96, %cst_30 [1] : vector<8x512xf32> to vector<8xf32>
    %100 = vector.shape_cast %99 : vector<8xf32> to vector<8x1xf32>
    %cst_31 = arith.constant 0.001953125 : f32
    %101 = vector.broadcast %cst_31 : f32 to vector<8x1xf32>
    %102 = arith.mulf %100, %101 : vector<8x1xf32>
    %103 = vector.broadcast %102 : vector<8x1xf32> to vector<8x512xf32>
    %104 = arith.subf %96, %103 : vector<8x512xf32>
    %105 = arith.mulf %104, %104 : vector<8x512xf32>
    %cst_32 = arith.constant dense<0.000000e+00> : vector<8xf32>
    %106 = vector.multi_reduction <add>, %105, %cst_32 [1] : vector<8x512xf32> to vector<8xf32>
    %107 = vector.shape_cast %106 : vector<8xf32> to vector<8x1xf32>
    %cst_33 = arith.constant 0.001953125 : f32
    %108 = vector.broadcast %cst_33 : f32 to vector<8x1xf32>
    %109 = arith.mulf %107, %108 : vector<8x1xf32>
    %cst_34 = arith.constant 9.99999974E-6 : f32
    %110 = vector.broadcast %cst_34 : f32 to vector<8x1xf32>
    %111 = arith.addf %109, %110 : vector<8x1xf32>
    %112 = math.rsqrt %111 : vector<8x1xf32>
    %113 = arith.mulf %97, %112 : vector<8x1xf32>
    %114 = vector.broadcast %113 : vector<8x1xf32> to vector<8x512xf32>
    %115 = arith.mulf %104, %114 : vector<8x512xf32>
    %116 = vector.broadcast %98 : vector<8x1xf32> to vector<8x512xf32>
    %117 = arith.addf %115, %116 : vector<8x512xf32>
    %cst_35 = arith.constant 0.000000e+00 : f32
    %118 = vector.broadcast %cst_35 : f32 to vector<8x512xf32>
    %119 = arith.maximumf %117, %118 : vector<8x512xf32>
    %c0_36 = arith.constant 0 : index
    %c0_37 = arith.constant 0 : index
    %120 = vector.load %arg9[%c0_36, %c0_37] : memref<8x512xf32, #tpu.memory_space<vmem>>, vector<8x512xf32>
    tpu.vector_store %arg9[%c0_36, %c0_37], %119 {strides = array<i32>} : memref<8x512xf32, #tpu.memory_space<vmem>>, vector<8x512xf32>,
    return
  }
  func.func @transform_0(%arg0: i32) -> (i32, i32) {
    %c0_i32 = arith.constant 0 : i32
    %c0_i32_0 = arith.constant 0 : i32
    %c0_i32_1 = arith.constant 0 : i32
    return %c0_i32, %c0_i32_0 : i32, i32
  }
  func.func @transform_1(%arg0: i32) -> (i32, i32) {
    %c0_i32 = arith.constant 0 : i32
    %c0_i32_0 = arith.constant 0 : i32
    %c0_i32_1 = arith.constant 0 : i32
    return %c0_i32, %c0_i32_0 : i32, i32
  }
  func.func @transform_2(%arg0: i32) -> (i32, i32) {
    %c0_i32 = arith.constant 0 : i32
    %c0_i32_0 = arith.constant 0 : i32
    %c0_i32_1 = arith.constant 0 : i32
    return %c0_i32, %c0_i32_0 : i32, i32
  }
  func.func @transform_3(%arg0: i32) -> (i32, i32) {
    %c0_i32 = arith.constant 0 : i32
    %c0_i32_0 = arith.constant 0 : i32
    %c0_i32_1 = arith.constant 0 : i32
    return %c0_i32, %c0_i32_0 : i32, i32
  }
  func.func @transform_4(%arg0: i32) -> (i32, i32) {
    %c0_i32 = arith.constant 0 : i32
    %c0_i32_0 = arith.constant 0 : i32
    %c0_i32_1 = arith.constant 0 : i32
    return %c0_i32, %c0_i32_0 : i32, i32
  }
  func.func @transform_5(%arg0: i32) -> (i32, i32) {
    %c0_i32 = arith.constant 0 : i32
    %c0_i32_0 = arith.constant 0 : i32
    %c0_i32_1 = arith.constant 0 : i32
    return %c0_i32, %c0_i32_0 : i32, i32
  }
  func.func @transform_6(%arg0: i32) -> (i32, i32) {
    %c0_i32 = arith.constant 0 : i32
    %c0_i32_0 = arith.constant 0 : i32
    %c0_i32_1 = arith.constant 0 : i32
    return %c0_i32, %c0_i32_0 : i32, i32
  }
  func.func @transform_7(%arg0: i32) -> (i32, i32) {
    %c0_i32 = arith.constant 0 : i32
    %c0_i32_0 = arith.constant 0 : i32
    %c0_i32_1 = arith.constant 0 : i32
    return %c0_i32, %c0_i32_0 : i32, i32
  }
  func.func @transform_8(%arg0: i32) -> (i32, i32) {
    %c0_i32 = arith.constant 0 : i32
    %c0_i32_0 = arith.constant 0 : i32
    %c0_i32_1 = arith.constant 0 : i32
    return %c0_i32, %c0_i32_0 : i32, i32
  }
}

</mosaic_0001>

<bundles_post_ra>
// kernel: unet_layer_forward.1
= control target key start
LH: loop header
LB: loop body
LE: loop exit
PB: predicated region body
PF: predicated region fallthrough
CT: control target
= control target key end

     0   :  { %s822_s9 = smov 17   ;;  %s824_s10 = smov 1   ;;  %v62_v50 = vlaneseq  ;;  %vm393_vm7 = vcmask 1041408   ;;  %vm360_vm9 = vcmask 1043456   ;;  %vm389_vm10 = vcmask 293888   ;;  %s1514_s0 = inlined_call_operand.vmem [shape: f32[4,512], index: 0, kind: input, shape index: {}]   ;;  %s1515_s1 = inlined_call_operand.vmem [shape: f32[9,512], index: 1, kind: input, shape index: {}]   ;;  %s1516_s2 = inlined_call_operand.vmem [shape: bf16[8,36], index: 2, kind: input, shape index: {}]   ;;  %s1517_s5 = inlined_call_operand.vmem [shape: f32[8,1], index: 5, kind: input, shape index: {}]   ;;  %s1518_s4 = inlined_call_operand.vmem [shape: f32[8,1], index: 4, kind: input, shape index: {}]   ;;  %s1519_s3 = inlined_call_operand.vmem [shape: bf16[8,72], index: 3, kind: input, shape index: {}]   ;;  %s1520_s6 = inlined_call_operand.vmem [shape: f32[8,1], index: 6, kind: input, shape index: {}]   ;;  %s1521_s7 = inlined_call_operand.vmem [shape: f32[8,1], index: 7, kind: input, shape index: {}]   ;;  %s1522_s8 = inlined_call_operand.vmem [shape: f32[8,512], index: 8, kind: output, shape index: {}]  }
   0x1   :  { %v879_v0 = vld [vmem:[%s1514_s0] sm:$0xff]  ;;  %v884_v1 = vld [vmem:[%s1514_s0 + $0x8] sm:$0xff]  ;;  %s823_s0 = smov 16   ;;  %s825_s11 = smov 15   ;;  %v989_v55 = vld [vmem:[%s1515_s1 + $0x10] sm:$0xff]  ;;  %vm663_vm14 = vcmask 588800  }
   0x2   :  { %43 = vst [vmem:[#allocation1] ss:$2 sm:$0xff] %v879_v0  ;;  %s826_s12 = smov 127   ;;  %s827_s13 = smov 113   ;;  %v984_v54 = vand.u32 127, %v62_v50  ;;  %v103_v57 = vperm.slane %v989_v55, 1 }
   0x3   :  { %45 = vst [vmem:[#allocation1 + $0x10] ss:$2 sm:$0xff] %v884_v1  ;;  %s828_s14 = smov 112   ;;  %s829_s15 = smov 111   ;;  %v998_v56 = vld [vmem:[%s1515_s1 + $0x28] ss:$0 sm:$0xff] }
   0x4   :  { %vm96_vm0 = vcmp.lt.s32.totalorder %v984_v54, 16  ;;  %vm192_vm1 = vcmp.lt.s32.totalorder %v984_v54, 127  ;;  %vm256_vm2 = vcmp.lt.s32.totalorder %v984_v54, 112  ;;  %vm288_vm3 = vcmp.lt.s32.totalorder %v984_v54, 111  ;;  %v1083_v50 = vld [vmem:[%s1515_s1 + $0x8] sm:$0xff] }
   0x5   :  { %vm64_vm4 = vcmp.lt.s32.totalorder %v984_v54, 17  ;;  %vm160_vm5 = vcmp.lt.s32.totalorder %v984_v54, 1  ;;  %v167_v61 = vperm.slane %v989_v55, 3  ;;  %v199_v62 = vperm.slane %v989_v55, 5 }
   0x6   :  { %v263_v63 = vperm.slane %v989_v55, 7  ;;  %vm224_vm6 = vcmp.lt.s32.totalorder %v984_v54, 113  ;;  %vm128_vm8 = vcmp.lt.s32.totalorder %v984_v54, 15 }
   0x9   :  { %v47_v2 = vld.sshfl [vmem:[#allocation1 + $0x8] sm:$0xff pattern:$0x75316420]  ;;  %v888_v3 = vld.sshfl [vmem:[#allocation1] sm:$0xff pattern:$0x75316420] }
   0xa   :  { %56 = vrot.lane.b32.xlu1 %v47_v2, %s822_s9  ;;  %77 = vst [vmem:[#allocation1] ss:$2 sm:$0xff] %v879_v0  ;;  %v48_v4 = vld.sshfl [vmem:[#allocation1 + $0x10] sm:$0xff pattern:$0x75316420] }
   0xb   :  { %v892_v5 = vld.sshfl [vmem:[#allocation1 + $0x18] sm:$0xff pattern:$0x75316420]  ;;  %58 = vrot.lane.b32.xlu2 %v48_v4, %s822_s9  ;;  %v71_v4 = vperm.slane %v989_v55, 0 }
   0xc   :  { %79 = vst [vmem:[#allocation1 + $0x10] ss:$2 sm:$0xff] %v884_v1 }
  0x11   :  { %v81_v6 = vld.sshfl [vmem:[#allocation1 + $0x8] sm:$0xff pattern:$0x75316420]  ;;  %v896_v7 = vld.sshfl [vmem:[#allocation1] sm:$0xff pattern:$0x75316420] }
  0x12   :  { %90 = vrot.lane.b32.xlu0 %v81_v6, %s823_s0  ;;  %109 = vst [vmem:[#allocation1] ss:$2 sm:$0xff] %v879_v0 }
  0x13   :  { %v82_v8 = vld.sshfl [vmem:[#allocation1 + $0x10] sm:$0xff pattern:$0x75316420]  ;;  %v83_v9 = vld.sshfl [vmem:[#allocation1 + $0x18] sm:$0xff pattern:$0x75316420] }
  0x14   :  { %92 = vrot.lane.b32.xlu1 %v82_v8, %s823_s0  ;;  %111 = vst [vmem:[#allocation1 + $0x10] ss:$2 sm:$0xff] %v884_v1 }
  0x19   :  { %v902_v10 = vld.sshfl [vmem:[#allocation1] sm:$0xff pattern:$0x75316420]  ;;  %v113_v11 = vld.sshfl [vmem:[#allocation1 + $0x8] sm:$0xff pattern:$0x75316420] }
  0x1a   :  { %141 = vst [vmem:[#allocation1] ss:$2 sm:$0xff] %v879_v0  ;;  %94 = vrot.lane.b32.xlu0 %v83_v9, %s823_s0  ;;  %v231_v9 = vperm.slane %v989_v55, 6 }
  0x1b   :  { %v114_v12 = vld.sshfl [vmem:[#allocation1 + $0x10] sm:$0xff pattern:$0x75316420]  ;;  %v115_v13 = vld.sshfl [vmem:[#allocation1 + $0x18] sm:$0xff pattern:$0x75316420] }
  0x1c   :  { %143 = vst [vmem:[#allocation1 + $0x10] ss:$2 sm:$0xff] %v884_v1 }
  0x21   :  { %v145_v14 = vld.sshfl [vmem:[#allocation1 + $0x8] sm:$0xff pattern:$0x75316420]  ;;  %v144_v15 = vld.sshfl [vmem:[#allocation1] sm:$0xff pattern:$0x75316420] }
  0x22   :  { %154 = vrot.lane.b32.xlu2 %v145_v14, %s824_s10  ;;  %173 = vst [vmem:[#allocation1] ss:$2 sm:$0xff] %v879_v0 }
  0x23   :  { %v146_v16 = vld.sshfl [vmem:[#allocation1 + $0x10] sm:$0xff pattern:$0x75316420]  ;;  %v147_v17 = vld.sshfl [vmem:[#allocation1 + $0x18] sm:$0xff pattern:$0x75316420] }
  0x24   :  { %175 = vst [vmem:[#allocation1 + $0x10] ss:$2 sm:$0xff] %v884_v1  ;;  %156 = vrot.lane.b32.xlu0 %v146_v16, %s824_s10  ;;  %v1053_v16 = vld [vmem:[%s1515_s1 + $0x30] ss:$0 sm:$0xff] }
  0x29   :  { %v177_v18 = vld.sshfl [vmem:[#allocation1 + $0x8] sm:$0xff pattern:$0x75316420]  ;;  %v176_v19 = vld.sshfl [vmem:[#allocation1] sm:$0xff pattern:$0x75316420] }
  0x2a   :  { %124 = vrot.lane.b32.xlu2 %v114_v12, %s825_s11  ;;  %205 = vst [vmem:[#allocation1] ss:$2 sm:$0xff] %v879_v0 }
  0x2b   :  { %v178_v20 = vld.sshfl [vmem:[#allocation1 + $0x10] sm:$0xff pattern:$0x75316420]  ;;  %v179_v21 = vld.sshfl [vmem:[#allocation1 + $0x18] sm:$0xff pattern:$0x75316420] }
  0x2c   :  { %188 = vrot.lane.b32.xlu1 %v178_v20, %s826_s12  ;;  %158 = vrot.lane.b32.xlu0 %v147_v17, %s824_s10  ;;  %207 = vst [vmem:[#allocation1 + $0x10] ss:$2 sm:$0xff] %v884_v1 }
  0x31   :  { %v208_v22 = vld.sshfl [vmem:[#allocation1] sm:$0xff pattern:$0x75316420]  ;;  %v209_v23 = vld.sshfl [vmem:[#allocation1 + $0x8] sm:$0xff pattern:$0x75316420] }
  0x32   :  { %237 = vst [vmem:[#allocation1] ss:$2 sm:$0xff] %v879_v0 }
  0x33   :  { %v211_v24 = vld.sshfl [vmem:[#allocation1 + $0x18] sm:$0xff pattern:$0x75316420]  ;;  %v210_v25 = vld.sshfl [vmem:[#allocation1 + $0x10] sm:$0xff pattern:$0x75316420] }
  0x34   :  { %190 = vrot.lane.b32.xlu1 %v179_v21, %s826_s12  ;;  %222 = vrot.lane.b32.xlu0 %v211_v24, %s827_s13  ;;  %239 = vst [vmem:[#allocation1 + $0x10] ss:$2 sm:$0xff] %v884_v1 }
  0x35   :  { %220 = vrot.lane.b32.xlu2 %v210_v25, %s827_s13 }
  0x39   :  { %v241_v26 = vld.sshfl [vmem:[#allocation1 + $0x8] sm:$0xff pattern:$0x75316420]  ;;  %v240_v27 = vld.sshfl [vmem:[#allocation1] sm:$0xff pattern:$0x75316420] }
  0x3a   :  { %269 = vst [vmem:[#allocation1] ss:$2 sm:$0xff] %v879_v0 }
  0x3b   :  { %v242_v28 = vld.sshfl [vmem:[#allocation1 + $0x10] sm:$0xff pattern:$0x75316420]  ;;  %v243_v29 = vld.sshfl [vmem:[#allocation1 + $0x18] sm:$0xff pattern:$0x75316420] }
  0x3c   :  { %184 = vrot.lane.b32.xlu1 %v176_v19, %s826_s12  ;;  %250 = vrot.lane.b32.xlu0 %v241_v26, %s828_s14  ;;  %271 = vst [vmem:[#allocation1 + $0x10] ss:$2 sm:$0xff] %v884_v1 }
  0x3d   :  { %216 = vrot.lane.b32.xlu2 %v208_v22, %s827_s13 }
  0x41   :  { %v272_v30 = vld.sshfl [vmem:[#allocation1] sm:$0xff pattern:$0x75316420]  ;;  %v273_v31 = vld.sshfl [vmem:[#allocation1 + $0x8] sm:$0xff pattern:$0x75316420] }
  0x42   :  { %325 = vst [vmem:[#allocation1] ss:$2 sm:$0xff] %v879_v0 }
  0x43   :  { %v274_v32 = vld.sshfl [vmem:[#allocation1 + $0x10] sm:$0xff pattern:$0x75316420]  ;;  %v275_v33 = vld.sshfl [vmem:[#allocation1 + $0x18] sm:$0xff pattern:$0x75316420] }
  0x44   :  { %186 = vrot.lane.b32.xlu1 %v177_v18, %s826_s12  ;;  %284 = vrot.lane.b32.xlu0 %v274_v32, %s829_s15  ;;  %327 = vst [vmem:[#allocation1 + $0x10] ss:$2 sm:$0xff] %v884_v1 }
  0x45   :  { %252 = vrot.lane.b32.xlu2 %v242_v28, %s828_s14 }
  0x4c   :  { %122 = vrot.lane.b32.xlu1 %v113_v11, %s825_s11  ;;  %286 = vrot.lane.b32.xlu0 %v275_v33, %s829_s15 }
  0x4d   :  { %254 = vrot.lane.b32.xlu2 %v243_v29, %s828_s14 }
  0x54   :  { %248 = vrot.lane.b32.xlu1 %v240_v27, %s828_s14  ;;  %280 = vrot.lane.b32.xlu0 %v272_v30, %s829_s15  ;;  %v1071_v27 = vld [vmem:[%s1515_s1 + $0x18] sm:$0xff] }
  0x55   :  { %60 = vrot.lane.b32.xlu2 %v892_v5, %s822_s9  ;;  %v200_v32 = vperm.slane %v1071_v27, 5 }
  0x5c   :  { %218 = vrot.lane.b32.xlu1 %v209_v23, %s827_s13  ;;  %88 = vrot.lane.b32.xlu0 %v896_v7, %s823_s0 }
  0x5d   :  { %282 = vrot.lane.b32.xlu2 %v273_v31, %s829_s15  ;;  %v330_v31 = vld.sshfl [vmem:[#allocation1 + $0x10] sm:$0xff pattern:$0x75316420] }
  0x64   :  { %126 = vrot.lane.b32.xlu1 %v115_v13, %s825_s11  ;;  %54 = vrot.lane.b32.xlu0 %v888_v3, %s822_s9 }
  0x65   :  { %152 = vrot.lane.b32.xlu2 %v144_v15, %s824_s10  ;;  %v948_v34 = vpop.permute.xlu2 %58  ;;  %v135_v15 = vperm.slane %v989_v55, 2 }
  0x6c   :  { %120 = vrot.lane.b32.xlu1 %v902_v10, %s825_s11 }
  0x7c   :  { %v950_v35 = vpop.permute.xlu2 %154  ;;  %v956_v38 = vpop.permute.xlu1 %56 }
  0x7d   :  { %v66_v7 = vsel %vm64_vm4, %v956_v38, %v948_v34 }
  0x7e   :  { %v75_v18 = vmul.f32 %v71_v4, %v66_v7 }
  0x84   :  { %v952_v36 = vpop.permute.xlu0 %90  ;;  %v954_v37 = vpop.permute.xlu2 %124 }
  0x86   :  { %v962_v41 = vpop.permute.xlu1 %92 }
  0x87   :  { %v98_v60 = vsel %vm96_vm0, %v952_v36, %v962_v41 }
  0x88   :  { %v107_v8 = vmul.f32 %v103_v57, %v98_v60 }
  0x8a   :  { %v307_v19 = vrot.slane %v107_v8, 4  ;;  %v264_v8 = vperm.slane %v1071_v27, 7 }
  0x8c   :  { %v958_v39 = vpop.permute.xlu0 %94 }
  0x8f   :  { %v960_v40 = vpop.permute.xlu2 %220 }
  0x96   :  { %v964_v42 = vpop.permute.xlu0 %156 }
  0x97   :  { %v966_v43 = vpop.permute.xlu2 %216  ;;  %v162_v5 = vsel %vm160_vm5, %v950_v35, %v964_v42 }
  0x98   :  { %v171_v14 = vmul.f32 %v167_v61, %v162_v5 }
  0x9a   :  { %v319_v28 = vrot.slane %v171_v14, 4 }
  0x9e   :  { %v968_v44 = vpop.permute.xlu1 %188  ;;  %v970_v45 = vpop.permute.xlu0 %158 }
  0x9f   :  { %v972_v46 = vpop.permute.xlu2 %252 }
  0xa6   :  { %v191_v47 = vpop.permute.xlu1 %190  ;;  %v974_v48 = vpop.permute.xlu0 %222 }
  0xa7   :  { %v976_v49 = vpop.permute.xlu2 %254  ;;  %v193_v1 = vsel %vm192_vm1, %v968_v44, %v191_v47  ;;  %v225_v11 = vsel %vm224_vm6, %v960_v40, %v974_v48 }
  0xa8   :  { %v257_v2 = vsel %vm256_vm2, %v972_v46, %v976_v49  ;;  %v203_v10 = vmul.f32 %v199_v62, %v193_v1  ;;  %v235_v20 = vmul.f32 %v231_v9, %v225_v11  ;;  %v363_v1 = vsel %vm360_vm9, %v75_v18, %v307_v19  ;;  %v1105_v11 = vld [vmem:[%s1515_s1 + $0x20] ss:$0 sm:$0xff] }
  0xa9   :  { %v267_v12 = vmul.f32 %v263_v63, %v257_v2  ;;  %v228_v18 = vsel %vm224_vm6, %v974_v48, %v966_v43 }
  0xaa   :  { %v342_v23 = vrot.slane %v203_v10, 4  ;;  %v1100_v10 = vld [vmem:[%s1515_s1 + $0x38] ss:$0 sm:$0xff] }
  0xab   :  { %v354_v24 = vrot.slane %v267_v12, 4 }
  0xac   :  { %v371_v5 = vsel %vm360_vm9, %v330_v31, %v342_v23 }
  0xae   :  { %v978_v51 = vpop.permute.xlu1 %184  ;;  %v980_v52 = vpop.permute.xlu0 %250 }
  0xaf   :  { %v982_v53 = vpop.permute.xlu2 %60  ;;  %v196_v33 = vsel %vm192_vm1, %v191_v47, %v978_v51  ;;  %v375_v47 = vsel %vm360_vm9, %v235_v20, %v354_v24 }
  0xb0   :  { %v204_v12 = vmul.f32 %v200_v32, %v196_v33 }
  0xb2   :  { %v343_v31 = vrot.slane %v204_v12, 4 }
  0xb6   :  { %v1003_v58 = vpop.permute.xlu1 %186  ;;  %v285_v59 = vpop.permute.xlu0 %284 }
  0xb7   :  { %v1012_v0 = vpop.permute.xlu2 %282  ;;  %v195_v19 = vsel %vm192_vm1, %v978_v51, %v1003_v58 }
  0xb8   :  { %v290_v3 = vsel %vm288_vm3, %v1012_v0, %v285_v59 }
  0xb9   :  { %v298_v6 = vmul.f32 %v998_v56, %v290_v3  ;;  %v232_v3 = vperm.slane %v1071_v27, 6 }
  0xbb   :  { %v386_v13 = vpack.c.bf16 %v298_v6, %v298_v6 }
  0xbd   :  { %v398_v17 = vsel %vm393_vm7, %v386_v13, 0  ;;  %v262_v13 = vperm.slane %v1083_v50, 7 }
  0xbe   :  { %v1060_v21 = vpop.permute.xlu1 %122  ;;  %v287_v22 = vpop.permute.xlu0 %286  ;;  %424 = vmatpush.bf16.msra.mxu1 %v398_v17  ;;  %v198_v17 = vperm.slane %v1083_v50, 5 }
  0xbf   :  { %v130_v25 = vsel %vm128_vm8, %v1060_v21, %v954_v37  ;;  %v289_v26 = vsel %vm288_vm3, %v285_v59, %v287_v22  ;;  %v1088_v59 = vld [vmem:[%s1515_s1] sm:$0xff] }
  0xc0   :  { %v139_v29 = vmul.f32 %v135_v15, %v130_v25  ;;  %v299_v30 = vmul.f32 %v1053_v16, %v289_v26  ;;  %v197_v14 = vperm.slane %v1088_v59, 5  ;;  %v261_v20 = vperm.slane %v1088_v59, 7 }
  0xc1   :  { %v383_v25 = vpack.c.bf16 %v375_v47, %v371_v5  ;;  %v194_v26 = vsel %vm192_vm1, %v1003_v58, %v968_v44  ;;  %v229_v5 = vperm.slane %v1088_v59, 6  ;;  %v230_v47 = vperm.slane %v1083_v50, 6 }
  0xc2   :  { %v387_v60 = vpack.c.bf16 %v299_v30, %v299_v30  ;;  %v367_v2 = vsel %vm360_vm9, %v139_v29, %v319_v28  ;;  %v258_v29 = vsel %vm256_vm2, %v980_v52, %v972_v46  ;;  %v202_v46 = vmul.f32 %v198_v17, %v194_v26 }
  0xc3   :  { %v379_v6 = vpack.c.bf16 %v367_v2, %v363_v1  ;;  %v266_v2 = vmul.f32 %v262_v13, %v258_v29  ;;  %v97_v26 = vsel %vm96_vm0, %v962_v41, %v958_v39 }
  0xc4   :  { %v401_v7 = vsel %vm393_vm7, %v387_v60, 0 }
  0xc5   :  { %437 = vmatpush.bf16.msra.mxu2 %v401_v7  ;;  %v331_v7 = vld.sshfl [vmem:[#allocation1 + $0x18] sm:$0xff pattern:$0x75316420] }
  0xc6   :  { %v249_v23 = vpop.permute.xlu1 %248  ;;  %v281_v24 = vpop.permute.xlu0 %280 }
  0xc7   :  { %v260_v28 = vsel %vm256_vm2, %v976_v49, %v249_v23  ;;  %v291_v48 = vsel %vm288_vm3, %v281_v24, %v1012_v0  ;;  %v292_v51 = vsel %vm288_vm3, %v287_v22, %v281_v24  ;;  %v236_v49 = vmul.f32 %v232_v3, %v228_v18 }
  0xc8   :  { %v268_v30 = vmul.f32 %v264_v8, %v260_v28  ;;  %v300_v44 = vmul.f32 %v1100_v10, %v292_v51  ;;  %v297_v58 = vmul.f32 %v1105_v11, %v291_v48  ;;  %v201_v0 = vmul.f32 %v197_v14, %v195_v19 }
  0xc9   :  { %v259_v22 = vsel %vm256_vm2, %v249_v23, %v980_v52  ;;  %438 = vmatpush.bf16.msra.mxu2 %v383_v25  ;;  %v104_v23 = vperm.slane %v1071_v27, 1  ;;  %v168_v24 = vperm.slane %v1071_v27, 3  ;;  %v1164_v25 = vld [vmem:[%s1516_s2] sm:$0xf]  ;;  %v341_v48 = vrot.slane %v202_v46, 4 }
  0xca   :  { %v355_v33 = vrot.slane %v268_v30, 4  ;;  %v388_v60 = vpack.c.bf16 %v300_v44, %v300_v44  ;;  %v385_v1 = vpack.c.bf16 %v297_v58, %v297_v58  ;;  %v265_v12 = vmul.f32 %v261_v20, %v259_v22 }
  0xcb   :  { %v340_v28 = vrot.slane %v201_v0, 4  ;;  %v372_v30 = vsel %vm360_vm9, %v331_v7, %v343_v31  ;;  %v329_v0 = vld.sshfl [vmem:[#allocation1 + $0x8] sm:$0xff pattern:$0x75316420]  ;;  %v353_v22 = vrot.slane %v266_v2, 4 }
  0xcc   :  { %v404_v52 = vsel %vm393_vm7, %v388_v60, 0  ;;  %v395_v18 = vsel %vm393_vm7, %v385_v1, 0  ;;  %v376_v19 = vsel %vm360_vm9, %v236_v49, %v355_v33  ;;  %v328_v49 = vld.sshfl [vmem:[#allocation1] sm:$0xff pattern:$0x75316420]  ;;  %v352_v46 = vrot.slane %v265_v12, 4 }
  0xcd   :  { %439 = vmatpush.bf16.msra.mxu2 %v379_v6  ;;  %450 = vmatpush.bf16.msra.mxu3 %v404_v52  ;;  %v161_v6 = vsel %vm160_vm5, %v964_v42, %v970_v45  ;;  %v384_v58 = vpack.c.bf16 %v376_v19, %v372_v30  ;;  %v72_v42 = vperm.slane %v1071_v27, 0  ;;  %v369_v60 = vsel %vm360_vm9, %v328_v49, %v340_v28  ;;  %v153_v19 = vpop.permute.xlu2 %152 }
  0xce   :  { %v219_v51 = vpop.permute.xlu1 %218  ;;  %v89_v29 = vpop.permute.xlu0 %88  ;;  %411 = vmatpush.bf16.msra.mxu0 %v395_v18  ;;  %v370_v2 = vsel %vm360_vm9, %v329_v0, %v341_v48  ;;  %v172_v12 = vmul.f32 %v168_v24, %v161_v6  ;;  %v164_v6 = vsel %vm160_vm5, %v970_v45, %v153_v19  ;;  %v101_v49 = vperm.slane %v1088_v59, 1 }
  0xcf   :  { %v226_v44 = vsel %vm224_vm6, %v219_v51, %v960_v40  ;;  %v227_v41 = vsel %vm224_vm6, %v966_v43, %v219_v51  ;;  %v108_v40 = vmul.f32 %v104_v23, %v97_v26  ;;  %v65_v43 = vsel %vm64_vm4, %v948_v34, %v982_v53 }
  0xd0   :  { %v233_v31 = vmul.f32 %v229_v5, %v227_v41  ;;  %v234_v33 = vmul.f32 %v230_v47, %v226_v44  ;;  %797 = vmatmul.msk.bf16.vlgmr.msra.gmra.mxu2 %vm389_vm10, %v1164_v25  ;;  %v136_v26 = vperm.slane %v1071_v27, 2  ;;  %v76_v34 = vmul.f32 %v72_v42, %v65_v43 }
  0xd1   :  { %451 = vmatpush.bf16.msra.mxu3 %v384_v58  ;;  %v308_v28 = vrot.slane %v108_v40, 4  ;;  %v165_v51 = vperm.slane %v1088_v59, 3  ;;  %v320_v48 = vrot.slane %v172_v12, 4  ;;  %v166_v44 = vperm.slane %v1083_v50, 3 }
  0xd2   :  { %v373_v1 = vsel %vm360_vm9, %v233_v31, %v352_v46  ;;  %v374_v7 = vsel %vm360_vm9, %v234_v33, %v353_v22  ;;  %v163_v58 = vsel %vm160_vm5, %v153_v19, %v950_v35  ;;  %v102_v0 = vperm.slane %v1083_v50, 1 }
  0xd3   :  { %v381_v52 = vpack.c.bf16 %v373_v1, %v369_v60  ;;  %v382_v18 = vpack.c.bf16 %v374_v7, %v370_v2  ;;  %v99_v45 = vsel %vm96_vm0, %v89_v29, %v952_v36  ;;  %v364_v31 = vsel %vm360_vm9, %v76_v34, %v308_v28 }
  0xd4   :  { %v169_v35 = vmul.f32 %v165_v51, %v164_v6  ;;  %v69_v33 = vperm.slane %v1088_v59, 0  ;;  %v70_v40 = vperm.slane %v1083_v50, 0  ;;  %v170_v60 = vmul.f32 %v166_v44, %v163_v58 }
  0xd5   :  { %412 = vmatpush.bf16.msra.mxu0 %v381_v52  ;;  %425 = vmatpush.bf16.msra.mxu1 %v382_v18  ;;  %v106_v2 = vmul.f32 %v102_v0, %v99_v45  ;;  %v133_v7 = vperm.slane %v1088_v59, 2  ;;  %v134_v12 = vperm.slane %v1083_v50, 2 }
  0xd6   :  { %v127_v30 = vpop.permute.xlu1 %126  ;;  %v55_v46 = vpop.permute.xlu0 %54  ;;  %v318_v19 = vrot.slane %v170_v60, 4 }
  0xd7   :  { %v129_v41 = vsel %vm128_vm8, %v954_v37, %v127_v30  ;;  %v100_v37 = vsel %vm96_vm0, %v958_v39, %v89_v29  ;;  %v67_v36 = vsel %vm64_vm4, %v55_v46, %v956_v38  ;;  %v68_v39 = vsel %vm64_vm4, %v982_v53, %v55_v46 }
  0xd8   :  { %v140_v22 = vmul.f32 %v136_v26, %v129_v41  ;;  %v105_v1 = vmul.f32 %v101_v49, %v100_v37  ;;  %v73_v52 = vmul.f32 %v69_v33, %v68_v39  ;;  %v74_v38 = vmul.f32 %v70_v40, %v67_v36 }
  0xd9   :  { %v317_v53 = vrot.slane %v169_v35, 4  ;;  %v306_v6 = vrot.slane %v106_v2, 4 }
  0xda   :  { %v368_v43 = vsel %vm360_vm9, %v140_v22, %v320_v48  ;;  %v305_v48 = vrot.slane %v105_v1, 4 }
  0xdb   :  { %v380_v29 = vpack.c.bf16 %v368_v43, %v364_v31 }
  0xdc   :  { %v361_v22 = vsel %vm360_vm9, %v73_v52, %v305_v48 }
  0xdd   :  { %452 = vmatpush.bf16.msra.mxu3 %v380_v29 }
  0xde   :  { %v121_v18 = vpop.permute.xlu1 %120 }
  0xdf   :  { %v131_v34 = vsel %vm128_vm8, %v121_v18, %v1060_v21  ;;  %v132_v28 = vsel %vm128_vm8, %v127_v30, %v121_v18  ;;  %v362_v21 = vsel %vm360_vm9, %v74_v38, %v306_v6 }
  0xe0   :  { %v137_v41 = vmul.f32 %v133_v7, %v132_v28  ;;  %v138_v58 = vmul.f32 %v134_v12, %v131_v34  ;;  %798 = vmatmul.msk.bf16.vlgmr.msra.gmra.mxu3 %vm389_vm10, %v1164_v25 }
  0xe2   :  { %v365_v46 = vsel %vm360_vm9, %v137_v41, %v317_v53  ;;  %v366_v45 = vsel %vm360_vm9, %v138_v58, %v318_v19 }
  0xe3   :  { %v377_v30 = vpack.c.bf16 %v365_v46, %v361_v22  ;;  %v378_v37 = vpack.c.bf16 %v366_v45, %v362_v21  ;;  %v830_v45 = vmov 0  }
  0xe4   :  { %812 = vset.pattern.permute.xlu1 %v830_v45  ;;  %813 = vset.pattern.permute.xlu0 %v830_v45 }
  0xe5   :  { %413 = vmatpush.bf16.msra.mxu0 %v377_v30  ;;  %426 = vmatpush.bf16.msra.mxu1 %v378_v37  ;;  %v459_v30 = vld [vmem:[%s1517_s5] sm:$0xff] }
  0xe6   :  { %503 = vperm.xlu1 %812, %v459_v30  }
  0xe8   :  { %795 = vmatmul.msk.bf16.vlgmr.msra.gmra.mxu0 %vm389_vm10, %v1164_v25  ;;  %796 = vmatmul.msk.bf16.vlgmr.msra.gmra.mxu1 %vm389_vm10, %v1164_v25 }
 0x153   :  { %v441_v31 = vpop.f32.mrf.mxu2 }
 0x15b   :  { %v443_v35 = vpop.f32.mrf.mxu2 }
 0x163   :  { %v454_v43 = vpop.f32.mrf.mxu3 }
 0x165   :  { %v415_v60 = vpop.f32.mrf.mxu0  ;;  %v428_v36 = vpop.f32.mrf.mxu1 }
 0x166   :  { %v460_v39 = vadd.f32 %v428_v36, %v415_v60 }
 0x168   :  { %v461_v29 = vadd.f32 %v460_v39, %v441_v31 }
 0x16a   :  { %v462_v1 = vadd.f32 %v461_v29, %v454_v43 }
 0x16b   :  { %v456_v2 = vpop.f32.mrf.mxu3 }
 0x16c   :  { %463 = vadd.xlane.f32.xlu2 %v462_v1  ;;  %v458_v1 = vld [vmem:[%s1518_s4] sm:$0xff] }
 0x16d   :  { %v417_v52 = vpop.f32.mrf.mxu0  ;;  %v430_v38 = vpop.f32.mrf.mxu1 }
 0x1df   :  { %v464_v18 = vpop.xlane.xlu2 %463 }
 0x1e0   :  { %v465_v53 = vmul.f32 0.001953125, %v464_v18  ;;  %v504_v18 = vpop.permute.xlu1 %503 }
 0x1e2   :  { %v466_v19 = vsub.f32 %v415_v60, %v465_v53  ;;  %v467_v34 = vsub.f32 %v428_v36, %v465_v53  ;;  %v468_v28 = vsub.f32 %v441_v31, %v465_v53  ;;  %v469_v48 = vsub.f32 %v454_v43, %v465_v53 }
 0x1e4   :  { %v470_v6 = vmul.f32 %v466_v19, %v466_v19  ;;  %v471_v25 = vmul.f32 %v467_v34, %v467_v34  ;;  %v472_v41 = vmul.f32 %v468_v28, %v468_v28  ;;  %v473_v22 = vmul.f32 %v469_v48, %v469_v48 }
 0x1e6   :  { %v474_v58 = vadd.f32 %v471_v25, %v470_v6 }
 0x1e8   :  { %v475_v46 = vadd.f32 %v474_v58, %v472_v41 }
 0x1ea   :  { %v476_v21 = vadd.f32 %v475_v46, %v473_v22 }
 0x1ec   :  { %477 = vadd.xlane.f32.xlu0 %v476_v21 }
 0x25f   :  { %v478_v37 = vpop.xlane.xlu0 %477 }
 0x260   :  { %v479_v35 = vmul.f32 0.001953125, %v478_v37 }
 0x262   :  { %v480_v31 = vadd.f32 1e-05, %v479_v35 }
 0x264   :  { %818 = vrsqrt.f32 %v480_v31  ;;  %vm487_vm12 = vweird.f32 %v480_v31 }
 0x26a   :  { %v819_v43 = vpop.eup %818 }
 0x26b   :  { %v482_v60 = vmul.f32 %v819_v43, %v480_v31  ;;  %vm488_vm11 = vweird.f32 %v819_v43 }
 0x26c   :  { %vm489_vm13 = vmor %vm487_vm12, %vm488_vm11 }
 0x26d   :  { %v483_v36 = vmul.f32 %v819_v43, %v482_v60 }
 0x26f   :  { %v484_v39 = vmul.f32 0.5, %v483_v36 }
 0x271   :  { %v485_v29 = vsub.f32 1.5, %v484_v39 }
 0x273   :  { %v486_v2 = vmul.f32 %v819_v43, %v485_v29 }
 0x275   :  { %v490_v52 = vsel %vm489_vm13, %v819_v43, %v486_v2 }
 0x276   :  { %v491_v38 = vmul.f32 %v490_v52, %v458_v1 }
 0x278   :  { %494 = vperm.xlu1 %812, %v491_v38  }
 0x2ea   :  { %v495_v53 = vpop.permute.xlu1 %494 }
 0x2eb   :  { %v498_v6 = vmul.f32 %v495_v53, %v467_v34  ;;  %v499_v25 = vmul.f32 %v495_v53, %v468_v28  ;;  %v500_v41 = vmul.f32 %v495_v53, %v469_v48  ;;  %v497_v21 = vmul.f32 %v495_v53, %v466_v19 }
 0x2ed   :  { %v507_v58 = vadd.f32 %v504_v18, %v498_v6  ;;  %v508_v22 = vadd.f32 %v504_v18, %v499_v25  ;;  %v509_v46 = vadd.f32 %v504_v18, %v500_v41  ;;  %v506_v34 = vadd.f32 %v504_v18, %v497_v21 }
 0x2ef   :  { %v1273_v45 = vmax.f32 %v507_v58, 0.0  ;;  %v1275_v30 = vmax.f32 %v508_v22, 0.0  ;;  %v1277_v37 = vmax.f32 %v509_v46, 0.0  ;;  %v1285_v28 = vmax.f32 %v506_v34, 0.0 }
 0x2f1   :  { %601 = vrot.lane.b32.xlu0 %v1277_v37, %s827_s13  ;;  %631 = vrot.lane.b32.xlu1 %v1275_v30, %s829_s15 }
 0x2f2   :  { %629 = vrot.lane.b32.xlu2 %v1273_v45, %s829_s15 }
 0x2f9   :  { %633 = vrot.lane.b32.xlu1 %v1277_v37, %s829_s15  ;;  %611 = vrot.lane.b32.xlu0 %v1285_v28, %s828_s14 }
 0x2fa   :  { %595 = vrot.lane.b32.xlu2 %v1285_v28, %s827_s13 }
 0x301   :  { %597 = vrot.lane.b32.xlu0 %v1273_v45, %s827_s13  ;;  %627 = vrot.lane.b32.xlu1 %v1285_v28, %s829_s15 }
 0x302   :  { %585 = vrot.lane.b32.xlu2 %v1277_v37, %s826_s12 }
 0x309   :  { %549 = vrot.lane.b32.xlu0 %v1273_v45, %s825_s11  ;;  %599 = vrot.lane.b32.xlu1 %v1275_v30, %s827_s13 }
 0x30a   :  { %579 = vrot.lane.b32.xlu2 %v1285_v28, %s826_s12 }
 0x311   :  { %567 = vrot.lane.b32.xlu0 %v1275_v30, %s824_s10  ;;  %615 = vrot.lane.b32.xlu1 %v1275_v30, %s828_s14 }
 0x312   :  { %565 = vrot.lane.b32.xlu2 %v1273_v45, %s824_s10 }
 0x319   :  { %569 = vrot.lane.b32.xlu0 %v1277_v37, %s824_s10  ;;  %617 = vrot.lane.b32.xlu1 %v1277_v37, %s828_s14 }
 0x31a   :  { %553 = vrot.lane.b32.xlu2 %v1277_v37, %s825_s11 }
 0x321   :  { %533 = vrot.lane.b32.xlu0 %v1273_v45, %s823_s0  ;;  %583 = vrot.lane.b32.xlu1 %v1275_v30, %s826_s12 }
 0x322   :  { %519 = vrot.lane.b32.xlu2 %v1275_v30, %s822_s9 }
 0x329   :  { %563 = vrot.lane.b32.xlu0 %v1285_v28, %s824_s10  ;;  %613 = vrot.lane.b32.xlu1 %v1273_v45, %s828_s14 }
 0x32a   :  { %547 = vrot.lane.b32.xlu2 %v1285_v28, %s825_s11 }
 0x331   :  { %515 = vrot.lane.b32.xlu0 %v1285_v28, %s822_s9  ;;  %551 = vrot.lane.b32.xlu1 %v1275_v30, %s825_s11 }
 0x332   :  { %537 = vrot.lane.b32.xlu2 %v1277_v37, %s823_s0 }
 0x339   :  { %581 = vrot.lane.b32.xlu1 %v1273_v45, %s826_s12 }
 0x341   :  { %517 = vrot.lane.b32.xlu1 %v1273_v45, %s822_s9 }
 0x349   :  { %535 = vrot.lane.b32.xlu1 %v1275_v30, %s823_s0 }
 0x34c   :  { %v630_v19 = vpop.permute.xlu2 %629 }
 0x351   :  { %521 = vrot.lane.b32.xlu1 %v1277_v37, %s822_s9 }
 0x354   :  { %v596_v52 = vpop.permute.xlu2 %595 }
 0x359   :  { %531 = vrot.lane.b32.xlu1 %v1285_v28, %s823_s0 }
 0x35c   :  { %v586_v46 = vpop.permute.xlu2 %585 }
 0x363   :  { %v602_v48 = vpop.permute.xlu0 %601  ;;  %v632_v35 = vpop.permute.xlu1 %631 }
 0x364   :  { %v636_v31 = vsel %vm288_vm3, %v630_v19, %v632_v35 }
 0x365   :  { %v640_v43 = vmul.f32 %v998_v56, %v636_v31 }
 0x367   :  { %v660_v60 = vpack.c.bf16 %v640_v43, %v640_v43 }
 0x369   :  { %v671_v36 = vsel %vm360_vm9, %v660_v60, 0 }
 0x36a   :  { %695 = vmatpush.bf16.msrb.mxu1 %v671_v36 }
 0x36b   :  { %v634_v39 = vpop.permute.xlu1 %633  ;;  %v612_v2 = vpop.permute.xlu0 %611 }
 0x36c   :  { %v635_v29 = vsel %vm288_vm3, %v632_v35, %v634_v39 }
 0x36d   :  { %v641_v1 = vmul.f32 %v1053_v16, %v635_v29 }
 0x36f   :  { %v661_v38 = vpack.c.bf16 %v641_v1, %v641_v1 }
 0x371   :  { %v674_v18 = vsel %vm360_vm9, %v661_v38, 0 }
 0x372   :  { %708 = vmatpush.bf16.msrb.mxu2 %v674_v18 }
 0x373   :  { %v628_v53 = vpop.permute.xlu1 %627  ;;  %v598_v58 = vpop.permute.xlu0 %597 }
 0x374   :  { %v637_v56 = vsel %vm288_vm3, %v628_v53, %v630_v19  ;;  %v638_v6 = vsel %vm288_vm3, %v634_v39, %v628_v53  ;;  %v1363_v19 = vpop.permute.xlu2 %579 }
 0x375   :  { %v639_v25 = vmul.f32 %v1105_v11, %v637_v56  ;;  %v642_v41 = vmul.f32 %v1100_v10, %v638_v6  ;;  %v606_v11 = vsel %vm224_vm6, %v602_v48, %v596_v52  ;;  %v590_v39 = vsel %vm192_vm1, %v586_v46, %v1363_v19 }
 0x376   :  { %v610_v38 = vmul.f32 %v606_v11, %v232_v3  ;;  %v594_v6 = vmul.f32 %v590_v39, %v200_v32  ;;  %v605_v32 = vsel %vm224_vm6, %v596_v52, %v598_v58 }
 0x377   :  { %v659_v22 = vpack.c.bf16 %v639_v25, %v639_v25  ;;  %v662_v16 = vpack.c.bf16 %v642_v41, %v642_v41 }
 0x378   :  { %v654_v3 = vpack.c.bf16 %v594_v6, %v1277_v37 }
 0x379   :  { %v668_v21 = vsel %vm360_vm9, %v659_v22, 0  ;;  %v677_v34 = vsel %vm360_vm9, %v662_v16, 0 }
 0x37a   :  { %682 = vmatpush.bf16.msrb.mxu0 %v668_v21  ;;  %721 = vmatpush.bf16.msrb.mxu3 %v677_v34 }
 0x37b   :  { %v600_v35 = vpop.permute.xlu1 %599  ;;  %v1361_v31 = vpop.permute.xlu0 %549 }
 0x37c   :  { %v603_v10 = vsel %vm224_vm6, %v600_v35, %v602_v48  ;;  %v566_v18 = vpop.permute.xlu2 %565  ;;  %v604_v34 = vsel %vm224_vm6, %v598_v58, %v600_v35 }
 0x37d   :  { %v609_v53 = vmul.f32 %v603_v10, %v231_v9 }
 0x383   :  { %v616_v43 = vpop.permute.xlu1 %615  ;;  %v568_v60 = vpop.permute.xlu0 %567 }
 0x384   :  { %v554_v21 = vpop.permute.xlu2 %553 }
 0x38b   :  { %v618_v36 = vpop.permute.xlu1 %617  ;;  %v570_v9 = vpop.permute.xlu0 %569 }
 0x38c   :  { %v619_v29 = vsel %vm256_vm2, %v616_v43, %v618_v36  ;;  %v622_v1 = vsel %vm256_vm2, %v618_v36, %v612_v2 }
 0x38d   :  { %v625_v48 = vmul.f32 %v619_v29, %v263_v63  ;;  %v626_v56 = vmul.f32 %v622_v1, %v264_v8 }
 0x38f   :  { %v657_v25 = vpack.c.bf16 %v625_v48, %v609_v53  ;;  %v658_v41 = vpack.c.bf16 %v626_v56, %v610_v38 }
 0x391   :  { %709 = vmatpush.bf16.msrb.mxu2 %v657_v25  ;;  %722 = vmatpush.bf16.msrb.mxu3 %v658_v41 }
 0x393   :  { %v584_v22 = vpop.permute.xlu1 %583  ;;  %v1408_v58 = vpop.permute.xlu0 %533 }
 0x394   :  { %v587_v16 = vsel %vm192_vm1, %v584_v22, %v586_v46 }
 0x395   :  { %v593_v63 = vmul.f32 %v587_v16, %v199_v62  ;;  %723 = vmatpush.bf16.msrb.mxu3 %v654_v3  ;;  %v607_v62 = vmul.f32 %v605_v32, %v229_v5  ;;  %v571_v5 = vsel %vm160_vm5, %v568_v60, %v570_v9  ;;  %v514_v32 = vld [vmem:[%s1519_s3] sm:$0xf] }
 0x396   :  { %v578_v29 = vmul.f32 %v571_v5, %v168_v24 }
 0x397   :  { %v653_v8 = vpack.c.bf16 %v593_v63, %v1275_v30  ;;  %v608_v30 = vmul.f32 %v604_v34, %v230_v47 }
 0x399   :  { %710 = vmatpush.bf16.msrb.mxu2 %v653_v8 }
 0x39b   :  { %v614_v11 = vpop.permute.xlu1 %613  ;;  %v564_v48 = vpop.permute.xlu0 %563 }
 0x39c   :  { %v620_v37 = vsel %vm256_vm2, %v614_v11, %v616_v43  ;;  %v621_v46 = vsel %vm256_vm2, %v612_v2, %v614_v11  ;;  %v520_v43 = vpop.permute.xlu2 %519  ;;  %v572_v2 = vsel %vm160_vm5, %v566_v18, %v568_v60  ;;  %v573_v25 = vsel %vm160_vm5, %v564_v48, %v566_v18 }
 0x39d   :  { %v623_v10 = vmul.f32 %v621_v46, %v261_v20  ;;  %v624_v52 = vmul.f32 %v620_v37, %v262_v13  ;;  %v577_v39 = vmul.f32 %v572_v2, %v167_v61  ;;  %v574_v61 = vsel %vm160_vm5, %v570_v9, %v564_v48 }
 0x39e   :  { %v576_v16 = vmul.f32 %v573_v25, %v166_v44 }
 0x39f   :  { %v655_v35 = vpack.c.bf16 %v623_v10, %v607_v62  ;;  %v656_v36 = vpack.c.bf16 %v624_v52, %v608_v30 }
 0x3a1   :  { %683 = vmatpush.bf16.msrb.mxu0 %v655_v35  ;;  %696 = vmatpush.bf16.msrb.mxu1 %v656_v36 }
 0x3a3   :  { %v552_v47 = vpop.permute.xlu1 %551  ;;  %v516_v46 = vpop.permute.xlu0 %515 }
 0x3a4   :  { %v555_v20 = vsel %vm128_vm8, %v552_v47, %v554_v21  ;;  %v556_v13 = vsel %vm128_vm8, %v1361_v31, %v552_v47  ;;  %v548_v56 = vpop.permute.xlu2 %547 }
 0x3a5   :  { %v561_v1 = vmul.f32 %v556_v13, %v135_v15  ;;  %v562_v60 = vmul.f32 %v555_v20, %v136_v26  ;;  %v557_v18 = vsel %vm128_vm8, %v548_v56, %v1361_v31  ;;  %v558_v3 = vsel %vm128_vm8, %v554_v21, %v548_v56 }
 0x3a6   :  { %v560_v9 = vmul.f32 %v557_v18, %v134_v12 }
 0x3a7   :  { %v649_v38 = vpack.c.bf16 %v577_v39, %v561_v1  ;;  %v650_v53 = vpack.c.bf16 %v578_v29, %v562_v60 }
 0x3a8   :  { %v648_v21 = vpack.c.bf16 %v576_v16, %v560_v9 }
 0x3a9   :  { %711 = vmatpush.bf16.msrb.mxu2 %v649_v38  ;;  %724 = vmatpush.bf16.msrb.mxu3 %v650_v53 }
 0x3ab   :  { %v582_v6 = vpop.permute.xlu1 %581 }
 0x3ac   :  { %v588_v24 = vsel %vm192_vm1, %v582_v6, %v584_v22  ;;  %v589_v15 = vsel %vm192_vm1, %v1363_v19, %v582_v6  ;;  %v575_v22 = vmul.f32 %v574_v61, %v165_v51  ;;  %v538_v8 = vpop.permute.xlu2 %537 }
 0x3ad   :  { %v591_v26 = vmul.f32 %v589_v15, %v197_v14  ;;  %v592_v41 = vmul.f32 %v588_v24, %v198_v17  ;;  %v559_v17 = vmul.f32 %v558_v3, %v133_v7 }
 0x3af   :  { %v651_v19 = vpack.c.bf16 %v591_v26, %v1285_v28  ;;  %v652_v14 = vpack.c.bf16 %v592_v41, %v1273_v45  ;;  %v647_v63 = vpack.c.bf16 %v575_v22, %v559_v17 }
 0x3b1   :  { %684 = vmatpush.bf16.msrb.mxu0 %v651_v19  ;;  %697 = vmatpush.bf16.msrb.mxu1 %v652_v14  ;;  %v731_v14 = vld [vmem:[%s1520_s6] sm:$0xff] }
 0x3b3   :  { %v518_v31 = vpop.permute.xlu1 %517 }
 0x3b4   :  { %v524_v51 = vsel %vm64_vm4, %v518_v31, %v520_v43  ;;  %v525_v62 = vsel %vm64_vm4, %v516_v46, %v518_v31 }
 0x3b5   :  { %685 = vmatpush.bf16.msrb.mxu0 %v647_v63  ;;  %698 = vmatpush.bf16.msrb.mxu1 %v648_v21  ;;  %v529_v7 = vmul.f32 %v524_v51, %v71_v4  ;;  %v528_v27 = vmul.f32 %v525_v62, %v70_v40  ;;  %v732_v63 = vld [vmem:[%s1521_s7] sm:$0xff] }
 0x3bb   :  { %v536_v44 = vpop.permute.xlu1 %535 }
 0x3bc   :  { %v540_v45 = vsel %vm96_vm0, %v1408_v58, %v536_v44  ;;  %v539_v34 = vsel %vm96_vm0, %v536_v44, %v538_v8 }
 0x3bd   :  { %v545_v12 = vmul.f32 %v540_v45, %v103_v57  ;;  %v546_v55 = vmul.f32 %v539_v34, %v104_v23 }
 0x3bf   :  { %v645_v28 = vpack.c.bf16 %v545_v12, %v529_v7 }
 0x3c1   :  { %712 = vmatpush.bf16.msrb.mxu2 %v645_v28 }
 0x3c3   :  { %v522_v11 = vpop.permute.xlu1 %521 }
 0x3c4   :  { %v523_v37 = vsel %vm64_vm4, %v520_v43, %v522_v11  ;;  %801 = vmatmul.msk.bf16.vlgmr.msrb.gmra.mxu2 %vm663_vm14, %v514_v32  ;;  %v526_v30 = vsel %vm64_vm4, %v522_v11, %v516_v46 }
 0x3c5   :  { %v530_v57 = vmul.f32 %v523_v37, %v72_v42  ;;  %v527_v42 = vmul.f32 %v526_v30, %v69_v33 }
 0x3c7   :  { %v646_v4 = vpack.c.bf16 %v546_v55, %v530_v57 }
 0x3c9   :  { %725 = vmatpush.bf16.msrb.mxu3 %v646_v4 }
 0x3cb   :  { %v532_v10 = vpop.permute.xlu1 %531 }
 0x3cc   :  { %v541_v52 = vsel %vm96_vm0, %v532_v10, %v1408_v58  ;;  %v542_v23 = vsel %vm96_vm0, %v538_v8, %v532_v10  ;;  %802 = vmatmul.msk.bf16.vlgmr.msrb.gmra.mxu3 %vm663_vm14, %v514_v32 }
 0x3cd   :  { %v543_v35 = vmul.f32 %v542_v23, %v101_v49  ;;  %v544_v36 = vmul.f32 %v541_v52, %v102_v0 }
 0x3cf   :  { %v643_v43 = vpack.c.bf16 %v543_v35, %v527_v42  ;;  %v644_v2 = vpack.c.bf16 %v544_v36, %v528_v27 }
 0x3d1   :  { %686 = vmatpush.bf16.msrb.mxu0 %v643_v43  ;;  %699 = vmatpush.bf16.msrb.mxu1 %v644_v2 }
 0x3d4   :  { %799 = vmatmul.msk.bf16.vlgmr.msrb.gmra.mxu0 %vm663_vm14, %v514_v32  ;;  %800 = vmatmul.msk.bf16.vlgmr.msrb.gmra.mxu1 %vm663_vm14, %v514_v32 }
 0x447   :  { %v714_v54 = vpop.f32.mrf.mxu2 }
 0x44f   :  { %v727_v58 = vpop.f32.mrf.mxu3  ;;  %v716_v40 = vpop.f32.mrf.mxu2 }
 0x451   :  { %v688_v5 = vpop.f32.mrf.mxu0  ;;  %v701_v47 = vpop.f32.mrf.mxu1 }
 0x452   :  { %v733_v33 = vadd.f32 %v701_v47, %v688_v5 }
 0x454   :  { %v734_v20 = vadd.f32 %v733_v33, %v714_v54 }
 0x456   :  { %v735_v59 = vadd.f32 %v734_v20, %v727_v58 }
 0x457   :  { %v729_v49 = vpop.f32.mrf.mxu3 }
 0x458   :  { %736 = vadd.xlane.f32.xlu2 %v735_v59 }
 0x459   :  { %v690_v50 = vpop.f32.mrf.mxu0  ;;  %v703_v0 = vpop.f32.mrf.mxu1 }
 0x4cb   :  { %v737_v13 = vpop.xlane.xlu2 %736 }
 0x4cc   :  { %v738_v39 = vmul.f32 0.001953125, %v737_v13 }
 0x4ce   :  { %v739_v29 = vsub.f32 %v688_v5, %v738_v39  ;;  %v740_v1 = vsub.f32 %v701_v47, %v738_v39  ;;  %v741_v60 = vsub.f32 %v714_v54, %v738_v39  ;;  %v742_v38 = vsub.f32 %v727_v58, %v738_v39 }
 0x4d0   :  { %v743_v53 = vmul.f32 %v739_v29, %v739_v29  ;;  %v744_v48 = vmul.f32 %v740_v1, %v740_v1  ;;  %v745_v56 = vmul.f32 %v741_v60, %v741_v60  ;;  %v746_v25 = vmul.f32 %v742_v38, %v742_v38 }
 0x4d2   :  { %v747_v6 = vadd.f32 %v744_v48, %v743_v53 }
 0x4d4   :  { %v748_v61 = vadd.f32 %v747_v6, %v745_v56 }
 0x4d6   :  { %v749_v24 = vadd.f32 %v748_v61, %v746_v25 }
 0x4d8   :  { %750 = vadd.xlane.f32.xlu0 %v749_v24 }
 0x54b   :  { %v751_v15 = vpop.xlane.xlu0 %750 }
 0x54c   :  { %v752_v26 = vmul.f32 0.001953125, %v751_v15 }
 0x54e   :  { %v753_v41 = vadd.f32 1e-05, %v752_v26 }
 0x550   :  { %820 = vrsqrt.f32 %v753_v41  ;;  %vm760_vm0 = vweird.f32 %v753_v41 }
 0x556   :  { %v821_v18 = vpop.eup %820 }
 0x557   :  { %v755_v3 = vmul.f32 %v821_v18, %v753_v41  ;;  %vm761_vm15 = vweird.f32 %v821_v18 }
 0x558   :  { %vm762_vm1 = vmor %vm760_vm0, %vm761_vm15 }
 0x559   :  { %v756_v22 = vmul.f32 %v821_v18, %v755_v3 }
 0x55b   :  { %v757_v16 = vmul.f32 0.5, %v756_v22 }
 0x55d   :  { %v758_v19 = vsub.f32 1.5, %v757_v16 }
 0x55f   :  { %v759_v17 = vmul.f32 %v821_v18, %v758_v19 }
 0x561   :  { %v763_v9 = vsel %vm762_vm1, %v821_v18, %v759_v17 }
 0x562   :  { %v764_v31 = vmul.f32 %v763_v9, %v731_v14 }
 0x564   :  { %767 = vperm.xlu1 %812, %v764_v31  }
 0x56c   :  { %776 = vperm.xlu1 %812, %v732_v63  }
 0x5d6   :  { %v768_v21 = vpop.permute.xlu1 %767 }
 0x5d7   :  { %v770_v51 = vmul.f32 %v768_v21, %v739_v29  ;;  %v771_v44 = vmul.f32 %v768_v21, %v740_v1  ;;  %v772_v45 = vmul.f32 %v768_v21, %v741_v60  ;;  %v773_v7 = vmul.f32 %v768_v21, %v742_v38 }
 0x5de   :  { %v777_v12 = vpop.permute.xlu1 %776 }
 0x5df   :  { %v779_v28 = vadd.f32 %v777_v12, %v770_v51  ;;  %v780_v8 = vadd.f32 %v777_v12, %v771_v44  ;;  %v781_v32 = vadd.f32 %v777_v12, %v772_v45  ;;  %v782_v34 = vadd.f32 %v777_v12, %v773_v7 }
 0x5e1   :  { %v783_v11 = vmax.f32 %v779_v28, 0.0  ;;  %v784_v37 = vmax.f32 %v780_v8, 0.0  ;;  %v785_v55 = vmax.f32 %v781_v32, 0.0  ;;  %v786_v57 = vmax.f32 %v782_v34, 0.0 }
 0x5e3   :  { %787 = vst [vmem:[%s1522_s8] sm:$0xff] %v783_v11 }
 0x5e4   :  { %788 = vst [vmem:[%s1522_s8 + $0x8] sm:$0xff] %v784_v37 }
 0x5e5   :  { %789 = vst [vmem:[%s1522_s8 + $0x10] sm:$0xff] %v785_v55 }
 0x5e6   :  { %790 = vst [vmem:[%s1522_s8 + $0x18] sm:$0xff] %v786_v57 }

</bundles_post_ra>
